<compile_context>
chip_gen: v7x
topology: tpu7x:2x2x1
jax: 0.10.0
libtpu: 0.0.40
codegen_flags: <defaults>
</compile_context>

<pallas_src>
import functools

import jax
import jax.numpy as jnp
from jax.experimental import pallas as pl
from jax.experimental.pallas import tpu as pltpu

MAX_SEGMENT_SLOTS = 1025          # same cap as the PyTorch module (1024 shards + 1)
_LANES = 128
_ROW_ALIGN = 16                   # int16 native tile is (16,128); also satisfies (8,128)
_MAX_BLOCK_ROWS = 4096            # (4096,128) int32 = 2 MiB input block per grid step
_VMEM_LIMIT_BYTES = 32 * 1024 * 1024


def _round_up(x, m):
    return ((x + m - 1) // m) * m


def _uniform_shard_width(segments, max_output_id, start_index):
    """Shard width if all shards are uniform AND segments[0] == start_index."""
    if len(segments) < 2:
        return None
    if segments[0] != start_index:        # guard: uniform path assumes off >= 0
        return None
    diffs = {segments[i + 1] - segments[i] for i in range(len(segments) - 1)}
    if len(diffs) != 1:
        return None
    w = diffs.pop()
    if w <= 0:
        return None
    last_w = start_index + max_output_id - segments[-1]
    if last_w <= 0 or last_w > w:
        return None
    return w


def _mc_remap_kernel(vals_ref, remapped_ref, bucket_ref, *,
                     max_output_id, start_index, segments, uniform_width):
    """One (block_rows, 128) tile: remap ids and bucketize against segments.

    vals_ref     : VMEM int32[block_rows,128]        -- raw input ids
    remapped_ref : VMEM int{16,32}[block_rows,128]   -- ids in [start, start+max_output_id)
    bucket_ref   : VMEM int16[block_rows,128]        -- shard index per id

    Segment boundaries are compile-time constants (static module state), so
    there is no scalar prefetch / SMEM table and no per-block scalar loads.
    """
    v = vals_ref[...]
    if max_output_id & (max_output_id - 1) == 0:
        # power-of-two output range -> modulo via bitwise AND (pure VPU)
        remapped = (v & jnp.int32(max_output_id - 1)) + jnp.int32(start_index)
    else:
        # constant divisor: expected to lower to mulhi+shift
        remapped = (v % jnp.int32(max_output_id)) + jnp.int32(start_index)
    remapped_ref[...] = remapped.astype(remapped_ref.dtype)

    if uniform_width is not None:
        # Uniform shards (common torchrec case): searchsorted == sub + shift/div.
        off = remapped - jnp.int32(segments[0])
        if uniform_width & (uniform_width - 1) == 0:
            bucket = off >> (uniform_width.bit_length() - 1)
        else:
            bucket = off // jnp.int32(uniform_width)
    else:
        # Generic path: O(num_segments) compare+add over baked constants.
        # Only intended for small shard counts (see module-level TODO).
        bucket = jnp.zeros_like(remapped)
        for s in segments:
            bucket = bucket + (remapped >= jnp.int32(s)).astype(jnp.int32)
        bucket = bucket - 1
    bucket_ref[...] = bucket.astype(bucket_ref.dtype)


@functools.partial(
    jax.jit, static_argnames=("max_output_id", "start_index", "segments"))
def _fused_remap(values, *, max_output_id, start_index, segments):
    """values: int32[N] flat concatenated ids (KJT.values()).

    Returns (remapped[N_pad], buckets[N_pad]) flat arrays, N_pad = next tile
    multiple of N.  Only the first N entries are valid; the tail is garbage
    (never re-sliced here to avoid extra HBM traffic).
    """
    n = int(values.shape[0])
    assert n > 0
    if values.dtype != jnp.int32:
        values = values.astype(jnp.int32)

    rows = pl.cdiv(n, _LANES)
    rows_padded = _round_up(rows, _ROW_ALIGN)      # pad waste <= 16*128 ids
    n_pad = rows_padded * _LANES
    if n_pad > n:
        values = jnp.pad(values, (0, n_pad - n))
    v2d = values.reshape(rows_padded, _LANES)

    # Block choice: as large as possible (fewer per-step overheads), but never
    # collapse a medium/large input to a single grid step (keep both v7x TCs fed).
    block_rows = min(_MAX_BLOCK_ROWS,
                     _round_up(pl.cdiv(rows_padded, 2), _ROW_ALIGN))
    grid = (pl.cdiv(rows_padded, block_rows),)

    uniform_width = _uniform_shard_width(list(segments), max_output_id, start_index)

    # Narrow output dtypes where the value range allows (HBM-bound kernel:
    # every byte of writeback counts).  Buckets always fit int16 (<=1024 shards).
    fits_i16 = (start_index >= -(2 ** 15)
                and start_index + max_output_id <= 2 ** 15)
    remapped_dtype = jnp.int16 if fits_i16 else jnp.int32
    bucket_dtype = jnp.int16

    kernel = functools.partial(
        _mc_remap_kernel,
        max_output_id=max_output_id,
        start_index=start_index,
        segments=tuple(segments),
        uniform_width=uniform_width,
    )

    blk = pl.BlockSpec((block_rows, _LANES), lambda i: (i, 0))
    bytes_accessed = n_pad * (4 + jnp.dtype(remapped_dtype).itemsize
                              + jnp.dtype(bucket_dtype).itemsize)
    remapped2d, bucket2d = pl.pallas_call(
        kernel,
        out_shape=(
            jax.ShapeDtypeStruct(v2d.shape, remapped_dtype),
            jax.ShapeDtypeStruct(v2d.shape, bucket_dtype),
        ),
        grid=grid,
        in_specs=[blk],
        out_specs=(blk, blk),
        compiler_params=pltpu.CompilerParams(
            dimension_semantics=("parallel",),
            vmem_limit_bytes=_VMEM_LIMIT_BYTES),
        cost_estimate=pl.CostEstimate(
            flops=5 * n_pad, transcendentals=0, bytes_accessed=bytes_accessed),
    )(v2d)

    return remapped2d.reshape(-1), bucket2d.reshape(-1)


class ManagedCollisionModuleJAX:
    """Minimal JAX mirror of torchrec ManagedCollisionModule state + remap.

    The remap operates on the flat KJT value stream; jagged lengths/offsets
    are untouched by this module and pass through unchanged.
    """

    def __init__(self, max_output_id, input_hash_size, remapping_range_start_index,
                 output_segments):
        assert len(output_segments) >= 1
        assert len(output_segments) <= MAX_SEGMENT_SLOTS, \
            "ManagedCollisionModule limited to 1024 shards"
        assert list(output_segments) == sorted(output_segments)
        # int32 carrier guards (TODO(synk): int64 ids unsupported on TPU vregs)
        assert input_hash_size <= 2 ** 31, "ids must fit in int32 on TPU"
        assert remapping_range_start_index + max_output_id <= 2 ** 31 - 1

        self._max_output_id = max_output_id
        self._input_hash_size = input_hash_size
        self._start_index = remapping_range_start_index
        self._output_segments = tuple(int(s) for s in output_segments)
        self._num_segments = len(output_segments)
        # buffer: _output_segments_tensor, padded to 1025 with -1 (as in torch).
        # Kept for state-dict parity; the kernel bakes the static python values.
        pad = [-1] * (MAX_SEGMENT_SLOTS - len(output_segments))
        self._output_segments_tensor = jnp.asarray(
            list(output_segments) + pad, dtype=jnp.int32)
        # buffer: _current_iter_tensor
        self._current_iter_tensor = jnp.zeros((1,), dtype=jnp.int32)

    def output_size(self):
        return self._max_output_id

    def input_size(self):
        return self._input_hash_size

    def buckets(self):
        return self._num_segments

    def remap(self, values):
        """values: int32[N] flat KJT values.  Returns flat (remapped, buckets)
        padded to the next tile multiple; first N entries are valid."""
        return _fused_remap(
            values,
            max_output_id=self._max_output_id,
            start_index=self._start_index,
            segments=self._output_segments,
        )

    def forward(self, values):
        """values: int32[N] flat KJT values (all features concatenated, as
        torchrec stores them).  Jagged lengths/offsets pass through unchanged."""
        self._current_iter_tensor = self._current_iter_tensor + 1
        remapped, buckets = self.remap(values)
        return {"values": remapped, "buckets": buckets,
                "valid_length": int(values.shape[0])}

    # TODO(synk): evict/profile/preprocess/open_slots/validate_state are
    # host-side eviction/profiling policy with no per-element kernel; omitted.


def _reference(values, max_output_id, start_index, segments):
    seg = jnp.asarray(segments, dtype=jnp.int32)
    ref_remap = (values % max_output_id) + start_index
    ref_bucket = jnp.sum(ref_remap[:, None] >= seg[None, :], axis=1).astype(jnp.int32) - 1
    return ref_remap.astype(jnp.int32), ref_bucket


if __name__ == "__main__":
    key = jax.random.PRNGKey(0)
    input_hash_size = 1000
    max_output_id = 32
    start_index = 0
    output_segments = [0, 8, 16, 24]   # 4 uniform shards of the output range

    mcm = ManagedCollisionModuleJAX(
        max_output_id=max_output_id,
        input_hash_size=input_hash_size,
        remapping_range_start_index=start_index,
        output_segments=output_segments,
    )

    # Two jagged features (batch=2) with ragged lengths 16 and 48.  torchrec's
    # KJT already stores values() flat, so the kernel consumes the flat stream.
    k1, k2, k3 = jax.random.split(key, 3)
    feats = {
        "f_a": jax.random.randint(k1, (16,), 0, input_hash_size, dtype=jnp.int32),
        "f_b": jax.random.randint(k2, (48,), 0, input_hash_size, dtype=jnp.int32),
    }
    flat_values = jnp.concatenate([feats["f_a"], feats["f_b"]])  # test setup only
    n = flat_values.shape[0]

    out = mcm.forward(flat_values)
    jax.block_until_ready((out["values"], out["buckets"]))

    # --- correctness: uniform-shard / power-of-two path --------------------
    remapped = out["values"][:n].astype(jnp.int32)
    buckets = out["buckets"][:n].astype(jnp.int32)
    ref_remap, ref_bucket = _reference(flat_values, max_output_id, start_index,
                                       output_segments)
    assert out["valid_length"] == n
    assert jnp.array_equal(remapped, ref_remap)
    assert jnp.array_equal(buckets, ref_bucket)

    # Per-feature views (test-time slicing only; jagged structure is untouched).
    off = 0
    for name, vals in feats.items():
        m = vals.shape[0]
        assert jnp.array_equal(remapped[off:off + m],
                               (vals % max_output_id) + start_index)
        off += m

    # --- correctness: non-uniform segments / non-power-of-two range --------
    mcm2 = ManagedCollisionModuleJAX(
        max_output_id=30, input_hash_size=input_hash_size,
        remapping_range_start_index=0, output_segments=[0, 5, 17, 29])
    out2 = mcm2.forward(flat_values)
    jax.block_until_ready((out2["values"], out2["buckets"]))
    ref_remap2, ref_bucket2 = _reference(flat_values, 30, 0, [0, 5, 17, 29])
    assert jnp.array_equal(out2["values"][:n].astype(jnp.int32), ref_remap2)
    assert jnp.array_equal(out2["buckets"][:n].astype(jnp.int32), ref_bucket2)

    # --- correctness: larger stream -> multi-block grid (>= 2 steps) -------
    big_values = jax.random.randint(k3, (20000,), 0, input_hash_size, dtype=jnp.int32)
    out3 = mcm.forward(big_values)
    jax.block_until_ready((out3["values"], out3["buckets"]))
    ref_remap3, ref_bucket3 = _reference(big_values, max_output_id, start_index,
                                         output_segments)
    nb = big_values.shape[0]
    assert jnp.array_equal(out3["values"][:nb].astype(jnp.int32), ref_remap3)
    assert jnp.array_equal(out3["buckets"][:nb].astype(jnp.int32), ref_bucket3)

    print("KERNEL_OK")
</pallas_src>

<mosaic_0001>
module attributes {stable_mosaic.version = 11 : i64} {
  func.func @_mc_remap_kernel(%arg0: i32, %arg1: memref<16x128xi32, #tpu.memory_space<vmem>>, %arg2: memref<16x128xi16, #tpu.memory_space<vmem>>, %arg3: memref<16x128xi16, #tpu.memory_space<vmem>>) attributes {dimension_semantics = [#tpu.dimension_semantics<parallel>], iteration_bounds = array<i64: 1>, scalar_prefetch = 0 : i64, scratch_operands = 0 : i64, tpu.core_type = #tpu.core_type<tc>, window_params = [{transform_indices = @transform_0, window_bounds = array<i64: 16, 128>}, {transform_indices = @transform_1, window_bounds = array<i64: 16, 128>}, {transform_indices = @transform_2, window_bounds = array<i64: 16, 128>}]} {
    %c0 = arith.constant 0 : index
    %c0_0 = arith.constant 0 : index
    %0 = vector.load %arg1[%c0, %c0_0] : memref<16x128xi32, #tpu.memory_space<vmem>>, vector<16x128xi32>
    %c31_i32 = arith.constant 31 : i32
    %1 = vector.broadcast %c31_i32 : i32 to vector<16x128xi32>
    %2 = arith.andi %0, %1 : vector<16x128xi32>
    %c0_i32 = arith.constant 0 : i32
    %3 = vector.broadcast %c0_i32 : i32 to vector<16x128xi32>
    %4 = arith.addi %2, %3 : vector<16x128xi32>
    %5 = arith.trunci %4 : vector<16x128xi32> to vector<16x128xi16>
    %c0_1 = arith.constant 0 : index
    %c0_2 = arith.constant 0 : index
    %6 = vector.load %arg2[%c0_1, %c0_2] : memref<16x128xi16, #tpu.memory_space<vmem>>, vector<16x128xi16>
    tpu.vector_store %arg2[%c0_1, %c0_2], %5 {strides = array<i32>} : memref<16x128xi16, #tpu.memory_space<vmem>>, vector<16x128xi16>,
    %c0_i32_3 = arith.constant 0 : i32
    %7 = vector.broadcast %c0_i32_3 : i32 to vector<16x128xi32>
    %8 = arith.subi %4, %7 : vector<16x128xi32>
    %c3_i32 = arith.constant 3 : i32
    %9 = vector.broadcast %c3_i32 : i32 to vector<16x128xi32>
    %10 = arith.shrsi %8, %9 : vector<16x128xi32>
    %11 = arith.trunci %10 : vector<16x128xi32> to vector<16x128xi16>
    %c0_4 = arith.constant 0 : index
    %c0_5 = arith.constant 0 : index
    %12 = vector.load %arg3[%c0_4, %c0_5] : memref<16x128xi16, #tpu.memory_space<vmem>>, vector<16x128xi16>
    tpu.vector_store %arg3[%c0_4, %c0_5], %11 {strides = array<i32>} : memref<16x128xi16, #tpu.memory_space<vmem>>, vector<16x128xi16>,
    return
  }
  func.func @transform_0(%arg0: i32) -> (i32, i32) {
    %c0_i32 = arith.constant 0 : i32
    %c0_i32_0 = arith.constant 0 : i32
    return %arg0, %c0_i32 : i32, i32
  }
  func.func @transform_1(%arg0: i32) -> (i32, i32) {
    %c0_i32 = arith.constant 0 : i32
    %c0_i32_0 = arith.constant 0 : i32
    return %arg0, %c0_i32 : i32, i32
  }
  func.func @transform_2(%arg0: i32) -> (i32, i32) {
    %c0_i32 = arith.constant 0 : i32
    %c0_i32_0 = arith.constant 0 : i32
    return %arg0, %c0_i32 : i32, i32
  }
}

</mosaic_0001>

<bundles_post_ra>
// kernel: _fused_remap.1
= control target key start
LH: loop header
LB: loop body
LE: loop exit
PB: predicated region body
PF: predicated region fallthrough
CT: control target
= control target key end

     0   :  { %8 = vsyncpa [#allocation3], 0  ;;  %s166_s0 = inlined_call_operand.vmem [shape: s32[16,128], index: 0, kind: input, shape index: {}]   ;;  %s167_s1 = inlined_call_operand.hbm [shape: s16[16,128], index: 1, kind: output, shape index: {0}]   ;;  %s168_s2 = inlined_call_operand.hbm [shape: s16[16,128], index: 2, kind: output, shape index: {1}]  }
   0x1   :  { %v12_v0 = vld [vmem:[%s166_s0] sm:$0xff]  ;;  %v13_v1 = vld [vmem:[%s166_s0 + $0x8] sm:$0xff] }
   0x2   :  { %9 = vsyncpa [#allocation5], 0  ;;  %v14_v2 = vand.u32 31, %v12_v0  ;;  %v15_v3 = vand.u32 31, %v13_v1  ;;  %s110_s13 = smov [#allocation2]   ;;  %s111_s15 = smov [#allocation4]  }
   0x3   :  { %s31_s14 = sshll.u32 %s110_s13, 4  ;;  %s43_s16 = sshll.u32 %s111_s15, 4  ;;  %s32_s14 = int_to_ptr.vmem [resolvable:$true] %s31_s14  ;;  %s135_s16 = int_to_ptr.vmem [resolvable:$true] %s43_s16 }
   0x4   :  { %v16_v4 = vpack.c.b16 %v14_v2, %v14_v2  ;;  %v17_v5 = vpack.c.b16 %v15_v3, %v15_v3  ;;  %v20_v6 = vshra.s32 %v14_v2, 3  ;;  %v21_v7 = vshra.s32 %v15_v3, 3  ;;  %s62_s17 = scalar_lea.vmem %s32_s14, 128  ;;  %p67_p1 = scmp.lt.s32.totalorder %s32_s14, %s32_s14 }
   0x5   :  { %p63_p0 = scmp.ne.s32.totalorder %s32_s14, %s62_s17  ;;  %p68_p2 = scmp.lt.s32.totalorder %s62_s17, %s62_s17 }
   0x6   :  { %18 = vst [vmem:[#allocation2] sm:$0xf] %v16_v4  ;;  %19 = vst [vmem:[#allocation2 + $0x4] sm:$0xf] %v17_v5  ;;  %v22_v8 = vpack.c.b16 %v20_v6, %v20_v6  ;;  %v23_v9 = vpack.c.b16 %v21_v7, %v21_v7 }
   0x7   :  { %p69_p3 = por %p68_p2, %p67_p1 }
   0x9   :  { %p70_p4 = pnand %p69_p3, %p63_p0 }
   0xb   :  { %73 = shalt.err (!%p70_p4)
}
   0xc   :  { %s74_s19 = scalar_lea.hbm %s167_s1, 128 }
   0xd   :  { %p75_p5 = scmp.ne.s32.totalorder %s167_s1, %s74_s19  ;;  %p78_p6 = scmp.lt.u32.totalorder %s74_s19, %s167_s1 }
   0xf   :  { %p80_p7 = pnand %p78_p6, %p75_p5 }
  0x11   :  { %83 = shalt.err (!%p80_p7)
}
  0x12   :  { %s112_s24 = smov 64   ;;  %s113_s25 = smov 4   ;;  %24 = vst [vmem:[#allocation4] sm:$0xf] %v22_v8  ;;  %25 = vst [vmem:[#allocation4 + $0x4] sm:$0xf] %v23_v9 }
  0x13   :  { %37 = dma.vmem_to_hbm [thread:$0]  %s32_s14, 128, %s167_s1, [#allocation3], %s112_s24, %s112_s24, %s113_s25  }
  0x14   :  { %s84_s28 = scalar_lea.vmem %s135_s16, 128  ;;  %p89_p9 = scmp.lt.s32.totalorder %s135_s16, %s135_s16 }
  0x15   :  { %p85_p8 = scmp.ne.s32.totalorder %s135_s16, %s84_s28  ;;  %p90_p10 = scmp.lt.s32.totalorder %s84_s28, %s84_s28 }
  0x17   :  { %p91_p11 = por %p90_p10, %p89_p9 }
  0x19   :  { %p92_p12 = pnand %p91_p11, %p85_p8 }
  0x1b   :  { %95 = shalt.err (!%p92_p12)
}
  0x1c   :  { %s96_s3 = scalar_lea.hbm %s168_s2, 128 }
  0x1d   :  { %p97_p13 = scmp.ne.s32.totalorder %s168_s2, %s96_s3  ;;  %p100_p0 = scmp.lt.u32.totalorder %s96_s3, %s168_s2 }
  0x1f   :  { %p102_p1 = pnand %p100_p0, %p97_p13 }
  0x21   :  { %105 = shalt.err (!%p102_p1)
}
  0x22   :  { %49 = dma.vmem_to_hbm [thread:$0]  %s135_s16, 128, %s168_s2, [#allocation5], %s112_s24, %s112_s24, %s113_s25  }
  0x23   :  { %106 = dma.done.wait [#allocation3], 128  }
  0x24   :  { %107 = vsyncadd [#allocation3], 4294967168 }
  0x25   :  { %108 = dma.done.wait [#allocation5], 128  }
  0x26   :  { %109 = vsyncadd [#allocation5], 4294967168 }
  0x27   :  { %56 = vsyncpa [#allocation3], 1 }
  0x28   :  { %57 = vsyncpa [#allocation5], 1 }

</bundles_post_ra>
